<compile_context>
chip_gen: v5e
topology: v5e:2x2
jax: 0.10.0
libtpu: 0.0.40
codegen_flags: <defaults>
</compile_context>

<pallas_src>
import math
import functools
import numpy as np
import jax
import jax.numpy as jnp
from jax.experimental import pallas as pl
from jax.experimental.pallas import tpu as pltpu


def _patch_expand_kernel(x_ref, xh_ref, w_ref, p_ref, out_ref, *, H, W, TH, C):
    # x_ref  : (1, TH*W, Cin) bf16  main tile  (image rows [t*TH, (t+1)*TH))
    # xh_ref : (1, W, Cin)    bf16  halo row   (first row of the next tile, clamped at H-1)
    # w_ref  : (Cin, 9C)      bf16  fused tap-grouped ConvTranspose weight, columns =
    #           [A: x(i,j)   -> W11|W12|W21|W22 (4C) | B: x(i,j+1) -> W10|W20 (2C)
    #          | C: x(i+1,j) -> W01|W02        (2C) | D: x(i+1,j+1) -> W00   (1C)]
    # p_ref  : (3, C) f32  rows = [conv bias, LN gamma, LN beta]
    # out_ref: (1, TH, 2, W, 2C)  [row parity, (col parity || channel)]
    t = pl.program_id(1)
    M = TH * W

    # Boundary masks, (M,1), no modulo: column / global-row indices from a (TH,W,1) iota.
    col = jax.lax.broadcasted_iota(jnp.int32, (TH, W, 1), 1).reshape(M, 1)
    row = jax.lax.broadcasted_iota(jnp.int32, (TH, W, 1), 0).reshape(M, 1) + t * TH
    right_ok = col < (W - 1)                 # x[i, j+1]   exists
    down_ok = row < (H - 1)                  # x[i+1, j]   exists
    diag_ok = right_ok & down_ok             # x[i+1, j+1] exists

    # One fused bf16 matmul over tile + halo rows (f32 accumulation on the MXU).
    x_ext = jnp.concatenate([x_ref[0], xh_ref[0]], axis=0)              # (M+W, Cin) bf16
    z = jnp.dot(x_ext, w_ref[...], preferred_element_type=jnp.float32)  # (M+W, 9C)  f32

    # Shift-after-matmul: realise the x[i,j+1] / x[i+1,j] / x[i+1,j+1] taps on the narrow
    # matmul outputs.  Down-shifts are W-aligned row slices into the halo (free when W%8==0);
    # the +1 column shifts use pltpu.roll (XLU slot); wrap-around rows are masked anyway.
    zA = z[:M, 0 * C:4 * C]
    zB = jnp.where(right_ok, pltpu.roll(z[:M, 4 * C:6 * C], M - 1, axis=0), 0.0)
    zC = jnp.where(down_ok, z[W:M + W, 6 * C:8 * C], 0.0)
    zD = jnp.where(diag_ok, pltpu.roll(z[W:M + W, 8 * C:9 * C], M - 1, axis=0), 0.0)

    # ConvTranspose2d(k=3, s=2, p=1, op=1) decomposed by output parity:
    y00 = zA[:, 0 * C:1 * C]                                   # out[2i  , 2j  ]
    y01 = zA[:, 1 * C:2 * C] + zB[:, :C]                       # out[2i  , 2j+1]
    y10 = zA[:, 2 * C:3 * C] + zC[:, :C]                       # out[2i+1, 2j  ]
    y11 = zA[:, 3 * C:4 * C] + zB[:, C:] + zC[:, C:] + zD      # out[2i+1, 2j+1]

    # Batched LayerNorm over all four parity planes, two-pass variance (bf16-safe).
    bias, gamma, beta = p_ref[0:1, :], p_ref[1:2, :], p_ref[2:3, :]
    y = jnp.concatenate([y00, y01, y10, y11], axis=0) + bias            # (4M, C)
    mu = jnp.mean(y, axis=-1, keepdims=True)
    d = y - mu
    var = jnp.mean(d * d, axis=-1, keepdims=True)
    yn = d * jax.lax.rsqrt(var + 1e-5) * gamma + beta

    row_even = jnp.concatenate([yn[0:M], yn[M:2 * M]], axis=-1)         # (M, 2C)
    row_odd = jnp.concatenate([yn[2 * M:3 * M], yn[3 * M:4 * M]], axis=-1)

    # Lane-dense stores: with 2C a multiple of 128 these are full unmasked (8,128) vregs.
    out_ref[0, :, 0, :, :] = row_even.reshape(TH, W, 2 * C).astype(out_ref.dtype)
    out_ref[0, :, 1, :, :] = row_odd.reshape(TH, W, 2 * C).astype(out_ref.dtype)


def make_fused_weights(w_ct, dtype=jnp.bfloat16):
    """ConvTranspose2d weight (Cin, Cout, 3, 3) -> one fused (Cin, 9*Cout) matmul weight.

    Columns grouped by input tap:
      A: x[i, j]     -> taps W11, W12, W21, W22   (4C)
      B: x[i, j+1]   -> taps W10, W20             (2C)
      C: x[i+1, j]   -> taps W01, W02             (2C)
      D: x[i+1, j+1] -> tap  W00                  (1C)
    """
    w_k = jnp.transpose(w_ct, (2, 3, 0, 1))                 # (ky, kx, Cin, Cout)
    cols = [w_k[1, 1], w_k[1, 2], w_k[2, 1], w_k[2, 2],     # A
            w_k[1, 0], w_k[2, 0],                           # B
            w_k[0, 1], w_k[0, 2],                           # C
            w_k[0, 0]]                                      # D
    return jnp.concatenate(cols, axis=-1).astype(dtype)


def patch_expand(x, H, W, w_all, b_conv, gamma, beta, *, tile_h=None,
                 out_dtype=None, vmem_limit_bytes=None):
    """x: (B, H*W, Cin) token-major. Returns (x_out: (B, 4HW, Cout), 2H, 2W)."""
    B, L, Cin = x.shape
    assert L == H * W
    C = w_all.shape[-1] // 9
    out_dtype = x.dtype if out_dtype is None else out_dtype
    tile_h = H if tile_h is None else tile_h
    assert H % tile_h == 0, "H must be divisible by tile_h"
    assert W % 8 == 0, "W must be a multiple of 8 (sublane-aligned tile / halo blocks)"

    x_bf16 = x.astype(jnp.bfloat16)                      # halve input DMA, bf16 MXU operands
    params = jnp.stack([b_conv, gamma, beta]).astype(jnp.float32)   # (3, C)
    grid = (B, H // tile_h)

    kernel = functools.partial(_patch_expand_kernel, H=H, W=W, TH=tile_h, C=C)

    cp_kwargs = dict(dimension_semantics=("parallel", "parallel"))
    if vmem_limit_bytes is not None:                     # explicit budget for Swin-scale shapes
        cp_kwargs["vmem_limit_bytes"] = vmem_limit_bytes

    out = pl.pallas_call(
        kernel,
        out_shape=jax.ShapeDtypeStruct((B, H, 2, W, 2 * C), out_dtype),
        grid_spec=pltpu.PrefetchScalarGridSpec(
            num_scalar_prefetch=0,
            grid=grid,
            in_specs=[
                # main tile
                pl.BlockSpec((1, tile_h * W, Cin), lambda b, t: (b, t, 0)),
                # one-row halo: first image row of the next tile (clamped; boundary is masked)
                pl.BlockSpec((1, W, Cin),
                             lambda b, t: (b, jnp.minimum((t + 1) * tile_h, H - 1), 0)),
                # parameters: constant index maps -> resident across grid steps, no re-DMA
                pl.BlockSpec((Cin, 9 * C), lambda b, t: (0, 0)),
                pl.BlockSpec((3, C), lambda b, t: (0, 0)),
            ],
            out_specs=pl.BlockSpec((1, tile_h, 2, W, 2 * C),
                                   lambda b, t: (b, t, 0, 0, 0)),
        ),
        compiler_params=pltpu.CompilerParams(**cp_kwargs),
    )(x_bf16, x_bf16, w_all, params)

    # (B, H, 2, W, 2C) -> (B, 2H*2W, C): pure reshape, zero data movement.
    return out.reshape(B, 4 * H * W, C), 2 * H, 2 * W


def reference(x, H, W, w_ct, b_ct, gamma, beta, *, matmul_dtype=jnp.float32):
    """Pure-JAX reference: ConvTranspose2d via lhs-dilated conv (flipped kernel) + LayerNorm."""
    B, L, Cin = x.shape
    Cout = w_ct.shape[1]
    x_img = x.reshape(B, H, W, Cin).astype(matmul_dtype)
    rhs = jnp.transpose(w_ct[:, :, ::-1, ::-1], (2, 3, 0, 1)).astype(matmul_dtype)
    y = jax.lax.conv_general_dilated(
        x_img, rhs, window_strides=(1, 1),
        padding=((1, 2), (1, 2)), lhs_dilation=(2, 2),
        dimension_numbers=('NHWC', 'HWIO', 'NHWC'),
        preferred_element_type=jnp.float32)
    y = y + b_ct[None, None, None, :]
    mu = jnp.mean(y, -1, keepdims=True)
    var = jnp.mean((y - mu) ** 2, -1, keepdims=True)
    y = (y - mu) * jax.lax.rsqrt(var + 1e-5) * gamma + beta
    return y.reshape(B, 4 * H * W, Cout)


if __name__ == "__main__":
    B, H, W = 2, 8, 8
    dim0, dim1, dim_scale = 128, 64, 2      # norm width = dim0 // dim_scale == dim1; 2C=128

    key = jax.random.PRNGKey(0)
    k1, k2 = jax.random.split(key)
    x = jax.random.normal(k1, (B, H * W, dim0), dtype=jnp.float32)

    # deterministic "module" params (ConvTranspose2d init: N(0, sqrt(2/fan_out)), bias=0;
    # LayerNorm: weight=1, bias=0)
    fan_out = 3 * 3 * dim1
    w_ct = jax.random.normal(k2, (dim0, dim1, 3, 3), dtype=jnp.float32) * math.sqrt(2.0 / fan_out)
    b_ct = jnp.zeros((dim1,), jnp.float32)
    gamma = jnp.ones((dim1,), jnp.float32)
    beta = jnp.zeros((dim1,), jnp.float32)

    w_all = make_fused_weights(w_ct)

    # tile_h=2 -> grid (B, H/tile_h) = (2, 4): 8 pipelined steps, both axes "parallel".
    out, Ho, Wo = patch_expand(x, H, W, w_all, b_ct, gamma, beta, tile_h=2)
    out = jax.block_until_ready(out)
    assert out.shape == (B, 4 * H * W, dim1) and Ho == 2 * H and Wo == 2 * W

    # Primary check: reference with the same bf16 MXU operands (f32 accumulation) -> tight tol.
    ref_bf16 = reference(x, H, W, w_ct, b_ct, gamma, beta, matmul_dtype=jnp.bfloat16)
    np.testing.assert_allclose(np.asarray(out), np.asarray(ref_bf16), rtol=2e-3, atol=2e-3)
    # Sanity check vs the pure-f32 module semantics (difference = bf16 operand rounding only).
    ref_f32 = reference(x, H, W, w_ct, b_ct, gamma, beta)
    np.testing.assert_allclose(np.asarray(out), np.asarray(ref_f32), rtol=6e-2, atol=6e-2)
    print("KERNEL_OK")
</pallas_src>

<mosaic_0001>
module attributes {stable_mosaic.version = 11 : i64} {
  func.func @_patch_expand_kernel(%arg0: i32, %arg1: i32, %arg2: memref<1x16x128xbf16, #tpu.memory_space<vmem>>, %arg3: memref<1x8x128xbf16, #tpu.memory_space<vmem>>, %arg4: memref<128x576xbf16, #tpu.memory_space<vmem>>, %arg5: memref<3x64xf32, #tpu.memory_space<vmem>>, %arg6: memref<1x2x2x8x128xf32, #tpu.memory_space<vmem>>) attributes {dimension_semantics = [#tpu.dimension_semantics<parallel>, #tpu.dimension_semantics<parallel>], iteration_bounds = array<i64: 2, 4>, scalar_prefetch = 0 : i64, scratch_operands = 0 : i64, tpu.core_type = #tpu.core_type<tc>, window_params = [{transform_indices = @transform_0, window_bounds = array<i64: 1, 16, 128>}, {transform_indices = @transform_1, window_bounds = array<i64: 1, 8, 128>}, {pipeline_mode = #tpu.pipeline_mode<synchronous>, transform_indices = @transform_2, window_bounds = array<i64: 128, 576>}, {pipeline_mode = #tpu.pipeline_mode<synchronous>, transform_indices = @transform_3, window_bounds = array<i64: 3, 64>}, {transform_indices = @transform_4, window_bounds = array<i64: 1, 2, 2, 8, 128>}]} {
    %0 = tpu.iota {dimensions = array<i32: 1>} : vector<2x8x1xi32>
    %1 = vector.shape_cast %0 : vector<2x8x1xi32> to vector<16x1xi32>
    %2 = tpu.iota {dimensions = array<i32: 0>} : vector<2x8x1xi32>
    %3 = vector.shape_cast %2 : vector<2x8x1xi32> to vector<16x1xi32>
    %c2_i32 = arith.constant 2 : i32
    %4 = arith.muli %arg1, %c2_i32 : i32
    %5 = vector.broadcast %4 : i32 to vector<16x1xi32>
    %6 = arith.addi %3, %5 : vector<16x1xi32>
    %c7_i32 = arith.constant 7 : i32
    %7 = vector.broadcast %c7_i32 : i32 to vector<16x1xi32>
    %8 = arith.cmpi slt, %1, %7 : vector<16x1xi32>
    %c7_i32_0 = arith.constant 7 : i32
    %9 = vector.broadcast %c7_i32_0 : i32 to vector<16x1xi32>
    %10 = arith.cmpi slt, %6, %9 : vector<16x1xi32>
    %11 = arith.andi %8, %10 : vector<16x1xi1>
    %c0 = arith.constant 0 : index
    %c0_1 = arith.constant 0 : index
    %c0_2 = arith.constant 0 : index
    %12 = vector.load %arg2[%c0, %c0_1, %c0_2] : memref<1x16x128xbf16, #tpu.memory_space<vmem>>, vector<1x16x128xbf16>
    %13 = vector.shape_cast %12 : vector<1x16x128xbf16> to vector<16x128xbf16>
    %c0_3 = arith.constant 0 : index
    %c0_4 = arith.constant 0 : index
    %c0_5 = arith.constant 0 : index
    %14 = vector.load %arg3[%c0_3, %c0_4, %c0_5] : memref<1x8x128xbf16, #tpu.memory_space<vmem>>, vector<1x8x128xbf16>
    %15 = vector.shape_cast %14 : vector<1x8x128xbf16> to vector<8x128xbf16>
    %16 = tpu.concatenate %13, %15 in 0 : vector<16x128xbf16>, vector<8x128xbf16> -> vector<24x128xbf16>
    %c0_6 = arith.constant 0 : index
    %c0_7 = arith.constant 0 : index
    %17 = vector.load %arg4[%c0_6, %c0_7] : memref<128x576xbf16, #tpu.memory_space<vmem>>, vector<128x576xbf16>
    %cst = arith.constant dense<0.000000e+00> : vector<24x576xf32>
    %18 = tpu.matmul %16, %17, %cst {dimension_numbers = #tpu.dot_dimension_numbers<[1], [0], [0], [1], [0, 0, 1, 1], [], []>} : vector<24x128xbf16>, vector<128x576xbf16>, vector<24x576xf32> -> vector<24x576xf32>
    %19 = vector.extract_strided_slice %18 {offsets = [0, 0], sizes = [16, 256], strides = [1, 1]} : vector<24x576xf32> to vector<16x256xf32>
    %20 = vector.extract_strided_slice %18 {offsets = [0, 256], sizes = [16, 128], strides = [1, 1]} : vector<24x576xf32> to vector<16x128xf32>
    %c15_i32 = arith.constant 15 : i32
    %21 = tpu.dynamic_rotate %20 by %c15_i32 dim 0 : vector<16x128xf32>, i32 -> vector<16x128xf32>
    %cst_8 = arith.constant 0.000000e+00 : f32
    %22 = vector.shape_cast %8 : vector<16x1xi1> to vector<16x1xi1>
    %23 = vector.broadcast %22 : vector<16x1xi1> to vector<16x128xi1>
    %24 = vector.broadcast %cst_8 : f32 to vector<16x128xf32>
    %25 = arith.select %23, %21, %24 : vector<16x128xi1>, vector<16x128xf32>
    %26 = vector.extract_strided_slice %18 {offsets = [8, 384], sizes = [16, 128], strides = [1, 1]} : vector<24x576xf32> to vector<16x128xf32>
    %cst_9 = arith.constant 0.000000e+00 : f32
    %27 = vector.shape_cast %10 : vector<16x1xi1> to vector<16x1xi1>
    %28 = vector.broadcast %27 : vector<16x1xi1> to vector<16x128xi1>
    %29 = vector.broadcast %cst_9 : f32 to vector<16x128xf32>
    %30 = arith.select %28, %26, %29 : vector<16x128xi1>, vector<16x128xf32>
    %31 = vector.extract_strided_slice %18 {offsets = [8, 512], sizes = [16, 64], strides = [1, 1]} : vector<24x576xf32> to vector<16x64xf32>
    %c15_i32_10 = arith.constant 15 : i32
    %32 = tpu.dynamic_rotate %31 by %c15_i32_10 dim 0 : vector<16x64xf32>, i32 -> vector<16x64xf32>
    %cst_11 = arith.constant 0.000000e+00 : f32
    %33 = vector.shape_cast %11 : vector<16x1xi1> to vector<16x1xi1>
    %34 = vector.broadcast %33 : vector<16x1xi1> to vector<16x64xi1>
    %35 = vector.broadcast %cst_11 : f32 to vector<16x64xf32>
    %36 = arith.select %34, %32, %35 : vector<16x64xi1>, vector<16x64xf32>
    %37 = vector.extract_strided_slice %19 {offsets = [0, 0], sizes = [16, 64], strides = [1, 1]} : vector<16x256xf32> to vector<16x64xf32>
    %38 = vector.extract_strided_slice %19 {offsets = [0, 64], sizes = [16, 64], strides = [1, 1]} : vector<16x256xf32> to vector<16x64xf32>
    %39 = vector.extract_strided_slice %25 {offsets = [0, 0], sizes = [16, 64], strides = [1, 1]} : vector<16x128xf32> to vector<16x64xf32>
    %40 = arith.addf %38, %39 : vector<16x64xf32>
    %41 = vector.extract_strided_slice %19 {offsets = [0, 128], sizes = [16, 64], strides = [1, 1]} : vector<16x256xf32> to vector<16x64xf32>
    %42 = vector.extract_strided_slice %30 {offsets = [0, 0], sizes = [16, 64], strides = [1, 1]} : vector<16x128xf32> to vector<16x64xf32>
    %43 = arith.addf %41, %42 : vector<16x64xf32>
    %44 = vector.extract_strided_slice %19 {offsets = [0, 192], sizes = [16, 64], strides = [1, 1]} : vector<16x256xf32> to vector<16x64xf32>
    %45 = vector.extract_strided_slice %25 {offsets = [0, 64], sizes = [16, 64], strides = [1, 1]} : vector<16x128xf32> to vector<16x64xf32>
    %46 = arith.addf %44, %45 : vector<16x64xf32>
    %47 = vector.extract_strided_slice %30 {offsets = [0, 64], sizes = [16, 64], strides = [1, 1]} : vector<16x128xf32> to vector<16x64xf32>
    %48 = arith.addf %46, %47 : vector<16x64xf32>
    %49 = arith.addf %48, %36 : vector<16x64xf32>
    %c0_12 = arith.constant 0 : index
    %c0_13 = arith.constant 0 : index
    %50 = vector.load %arg5[%c0_12, %c0_13] : memref<3x64xf32, #tpu.memory_space<vmem>>, vector<1x64xf32>
    %c1 = arith.constant 1 : index
    %c0_14 = arith.constant 0 : index
    %51 = vector.load %arg5[%c1, %c0_14] : memref<3x64xf32, #tpu.memory_space<vmem>>, vector<1x64xf32>
    %c2 = arith.constant 2 : index
    %c0_15 = arith.constant 0 : index
    %52 = vector.load %arg5[%c2, %c0_15] : memref<3x64xf32, #tpu.memory_space<vmem>>, vector<1x64xf32>
    %53 = tpu.concatenate %37, %40, %43, %49 in 0 : vector<16x64xf32>, vector<16x64xf32>, vector<16x64xf32>, vector<16x64xf32> -> vector<64x64xf32>
    %54 = vector.broadcast %50 : vector<1x64xf32> to vector<64x64xf32>
    %55 = arith.addf %53, %54 : vector<64x64xf32>
    %cst_16 = arith.constant dense<0.000000e+00> : vector<64xf32>
    %56 = vector.multi_reduction <add>, %55, %cst_16 [1] : vector<64x64xf32> to vector<64xf32>
    %57 = vector.shape_cast %56 : vector<64xf32> to vector<64x1xf32>
    %cst_17 = arith.constant 6.400000e+01 : f32
    %58 = vector.broadcast %cst_17 : f32 to vector<64x1xf32>
    %59 = arith.divf %57, %58 : vector<64x1xf32>
    %60 = vector.broadcast %59 : vector<64x1xf32> to vector<64x64xf32>
    %61 = arith.subf %55, %60 : vector<64x64xf32>
    %62 = arith.mulf %61, %61 : vector<64x64xf32>
    %cst_18 = arith.constant dense<0.000000e+00> : vector<64xf32>
    %63 = vector.multi_reduction <add>, %62, %cst_18 [1] : vector<64x64xf32> to vector<64xf32>
    %64 = vector.shape_cast %63 : vector<64xf32> to vector<64x1xf32>
    %cst_19 = arith.constant 6.400000e+01 : f32
    %65 = vector.broadcast %cst_19 : f32 to vector<64x1xf32>
    %66 = arith.divf %64, %65 : vector<64x1xf32>
    %cst_20 = arith.constant 9.99999974E-6 : f32
    %67 = vector.broadcast %cst_20 : f32 to vector<64x1xf32>
    %68 = arith.addf %66, %67 : vector<64x1xf32>
    %69 = math.rsqrt %68 : vector<64x1xf32>
    %70 = vector.broadcast %69 : vector<64x1xf32> to vector<64x64xf32>
    %71 = arith.mulf %61, %70 : vector<64x64xf32>
    %72 = vector.broadcast %51 : vector<1x64xf32> to vector<64x64xf32>
    %73 = arith.mulf %71, %72 : vector<64x64xf32>
    %74 = vector.broadcast %52 : vector<1x64xf32> to vector<64x64xf32>
    %75 = arith.addf %73, %74 : vector<64x64xf32>
    %76 = vector.extract_strided_slice %75 {offsets = [0, 0], sizes = [16, 64], strides = [1, 1]} : vector<64x64xf32> to vector<16x64xf32>
    %77 = vector.extract_strided_slice %75 {offsets = [16, 0], sizes = [16, 64], strides = [1, 1]} : vector<64x64xf32> to vector<16x64xf32>
    %78 = tpu.concatenate %76, %77 in 1 : vector<16x64xf32>, vector<16x64xf32> -> vector<16x128xf32>
    %79 = vector.extract_strided_slice %75 {offsets = [32, 0], sizes = [16, 64], strides = [1, 1]} : vector<64x64xf32> to vector<16x64xf32>
    %80 = vector.extract_strided_slice %75 {offsets = [48, 0], sizes = [16, 64], strides = [1, 1]} : vector<64x64xf32> to vector<16x64xf32>
    %81 = tpu.concatenate %79, %80 in 1 : vector<16x64xf32>, vector<16x64xf32> -> vector<16x128xf32>
    %82 = vector.shape_cast %78 : vector<16x128xf32> to vector<2x8x128xf32>
    %c0_21 = arith.constant 0 : index
    %c0_22 = arith.constant 0 : index
    %c0_23 = arith.constant 0 : index
    %c0_24 = arith.constant 0 : index
    %c0_25 = arith.constant 0 : index
    %83 = vector.load %arg6[%c0_21, %c0_22, %c0_23, %c0_24, %c0_25] : memref<1x2x2x8x128xf32, #tpu.memory_space<vmem>>, vector<1x2x1x8x128xf32>
    %84 = vector.shape_cast %83 : vector<1x2x1x8x128xf32> to vector<2x8x128xf32>
    %85 = vector.shape_cast %82 : vector<2x8x128xf32> to vector<1x2x1x8x128xf32>
    tpu.vector_store %arg6[%c0_21, %c0_22, %c0_23, %c0_24, %c0_25], %85 {strides = array<i32>} : memref<1x2x2x8x128xf32, #tpu.memory_space<vmem>>, vector<1x2x1x8x128xf32>,
    %86 = vector.shape_cast %81 : vector<16x128xf32> to vector<2x8x128xf32>
    %c0_26 = arith.constant 0 : index
    %c0_27 = arith.constant 0 : index
    %c1_28 = arith.constant 1 : index
    %c0_29 = arith.constant 0 : index
    %c0_30 = arith.constant 0 : index
    %87 = vector.load %arg6[%c0_26, %c0_27, %c1_28, %c0_29, %c0_30] : memref<1x2x2x8x128xf32, #tpu.memory_space<vmem>>, vector<1x2x1x8x128xf32>
    %88 = vector.shape_cast %87 : vector<1x2x1x8x128xf32> to vector<2x8x128xf32>
    %89 = vector.shape_cast %86 : vector<2x8x128xf32> to vector<1x2x1x8x128xf32>
    tpu.vector_store %arg6[%c0_26, %c0_27, %c1_28, %c0_29, %c0_30], %89 {strides = array<i32>} : memref<1x2x2x8x128xf32, #tpu.memory_space<vmem>>, vector<1x2x1x8x128xf32>,
    return
  }
  func.func @transform_0(%arg0: i32, %arg1: i32) -> (i32, i32, i32) {
    %c0_i32 = arith.constant 0 : i32
    %c0_i32_0 = arith.constant 0 : i32
    return %arg0, %arg1, %c0_i32 : i32, i32, i32
  }
  func.func @transform_1(%arg0: i32, %arg1: i32) -> (i32, i32, i32) {
    %c1_i32 = arith.constant 1 : i32
    %0 = arith.addi %arg1, %c1_i32 : i32
    %c2_i32 = arith.constant 2 : i32
    %1 = arith.muli %0, %c2_i32 : i32
    %c7_i32 = arith.constant 7 : i32
    %2 = arith.minsi %1, %c7_i32 : i32
    %c0_i32 = arith.constant 0 : i32
    %c0_i32_0 = arith.constant 0 : i32
    return %arg0, %2, %c0_i32 : i32, i32, i32
  }
  func.func @transform_2(%arg0: i32, %arg1: i32) -> (i32, i32) {
    %c0_i32 = arith.constant 0 : i32
    %c0_i32_0 = arith.constant 0 : i32
    %c0_i32_1 = arith.constant 0 : i32
    return %c0_i32, %c0_i32_0 : i32, i32
  }
  func.func @transform_3(%arg0: i32, %arg1: i32) -> (i32, i32) {
    %c0_i32 = arith.constant 0 : i32
    %c0_i32_0 = arith.constant 0 : i32
    %c0_i32_1 = arith.constant 0 : i32
    return %c0_i32, %c0_i32_0 : i32, i32
  }
  func.func @transform_4(%arg0: i32, %arg1: i32) -> (i32, i32, i32, i32, i32) {
    %c0_i32 = arith.constant 0 : i32
    %c0_i32_0 = arith.constant 0 : i32
    %c0_i32_1 = arith.constant 0 : i32
    %c0_i32_2 = arith.constant 0 : i32
    return %arg0, %arg1, %c0_i32, %c0_i32_0, %c0_i32_1 : i32, i32, i32, i32, i32
  }
}

</mosaic_0001>

<bundles_post_ra>
// kernel: tpu_custom_call.1
= control target key start
LH: loop header
LB: loop body
LE: loop exit
PB: predicated region body
PF: predicated region fallthrough
CT: control target
= control target key end

     0   :  { %s2086_s0 = inlined_call_operand.vmem [shape: bf16[2,64,128], index: 0, kind: input, shape index: {}]   ;;  %s2087_s1 = inlined_call_operand.vmem [shape: bf16[2,64,128], index: 1, kind: input, shape index: {}]   ;;  %s2088_s2 = inlined_call_operand.vmem [shape: bf16[128,576], index: 2, kind: input, shape index: {}]   ;;  %s2089_s3 = inlined_call_operand.vmem [shape: f32[3,64], index: 3, kind: input, shape index: {}]   ;;  %s2090_s4 = inlined_call_operand.hbm [shape: f32[2,8,2,8,128], index: 4, kind: output, shape index: {}]  }
   0x1   :  { %2092 = sst [smem:[#allocation6_spill]] %s2086_s0 }
   0x2   :  { %9 = vsyncpa [#allocation3], 0 }
   0x3   :  { %11 = vsyncpa [#allocation3 + $0x1], 0  ;;  %s1538_s15 = smov 0   ;;  %s1540_s16 = smov 0  }
   0x4   :  { %s1542_s17 = smov 0   ;;  %s1544_s18 = smov 0  }
   0x5   :  { %s1546_s19 = smov 0   ;;  %s1548_s20 = smov 0  }
   0x6   :  { %s1550_s21 = smov 0   ;;  %s1552_s22 = smov 0  }
   0x7 LB: > { %s1070_s23 = sadd.s32 4294967295, %s1507_s22   ;;  %s1071_s24 = sadd.s32 4294967294, %s1507_s22   ;;  %s1507_s22 = sphi %s1552_s22, %s17_s22   ;;  %s1503_s21 = sphi %s1550_s21, %s2109_s21   ;;  %s1499_s20 = sphi %s1548_s20, %s2108_s20   ;;  %s1495_s19 = sphi %s1546_s19, %s2107_s19   ;;  %s1491_s18 = sphi %s1544_s18, %s2106_s18   ;;  %s1487_s17 = sphi %s1542_s17, %s2105_s17   ;;  %s1483_s16 = sphi %s1540_s16, %s2104_s16   ;;  %s1479_s15 = sphi %s1538_s15, %s2103_s15  }
   0x8   : > { %s26_s25 = sadd.s32 1, %s1499_s20  ;;  %s29_s26 = sadd.s32 1, %s1503_s21 }
   0x9   : > { %p27_p0 = scmp.ge.s32.totalorder %s26_s25, 4  ;;  %p154_p1 = scmp.ne.s32.totalorder %s1487_s17, %s1483_s16 }
   0xa   : > { %p155_p2 = scmp.eq.s32.totalorder %s1070_s23, 7  ;;  %p160_p5 = scmp.ne.s32.totalorder %s1483_s16, %s1479_s15 }
   0xb   : > { %s2111_s25 = smov (%p27_p0, %s26_s25), 0  ;;  %s2113_s26 = smov (!%p27_p0, %s29_s26), %s1503_s21 }
   0xc   : > { %s140_s27 = ssub.s32 %s1499_s20, %s2111_s25  ;;  %p1589_p3 = por %p155_p2, %p154_p1 }
   0xd   : > { %p31_p4 = scmp.ge.s32.totalorder %s2113_s26, 2  ;;  %p161_p6 = scmp.eq.s32.totalorder %s1071_s24, 7 }
   0xe   : > { %p1076_p7 = scmp.ge.s32.totalorder %s1507_s22, 1  ;;  %p217_p9 = scmp.lt.s32.totalorder %s1507_s22, 9 }
   0xf   : > { %s2115_s26 = smov (%p31_p4, %s2113_s26), 0  ;;  %p1598_p8 = por %p161_p6, %p160_p5 }
  0x10   : > { %2094 = sst [smem:[#allocation5_spill]] %s2115_s26  ;;  %s139_s30 = ssub.s32 %s1503_s21, %s2115_s26 }
  0x11   : > { %s144_s5 = sadd.s32 1, %s1487_s17  ;;  %s141_s6 = sor.u32 %s140_s27, %s139_s30 }
  0x12   : > { %p218_p10 = pnand %p1076_p7, %p217_p9  ;;  %p142_p11 = scmp.eq.s32.totalorder %s141_s6, 0 }
  0x13   : > { %s1778_s24 = sshll.u32 (!%p218_p10), %s1491_s18, 1  ;;  %p260_p12 = scmp.lt.s32.totalorder (!%p218_p10), %s1495_s19, 1 }
  0x14   : > { %s1607_s7 = scalar_select %p142_p11, %s1487_s17, %s144_s5  }
  0x15   : > { %221 = sbr.rel (%p218_p10) target bundleno = 860 (0x35c), region = 36  ;;  %p262_p13 = scmp.lt.s32.totalorder (!%p218_p10), %s1778_s24, 7 }
  0x16   : > { %s2096_s26 = sadd.s32 (!%p218_p10), 2, %s1778_s24  ;;  %s2098_s0 = sld [smem:[#allocation6_spill]] (!%p218_p10) }
  0x17   : > { %p1822_p0 = scmp.lt.s32.totalorder (!%p218_p10), %s2096_s26, 7  ;;  %s256_s23 = sand.u32 (!%p218_p10), 1, %s1483_s16  }
  0x18   : > { %s1308_s30 = sshll.u32 (!%p218_p10), %s1491_s18, 2  ;;  %s952_s26 = scalar_lea.sflag (!%p218_p10), [#allocation3], %s256_s23 }
  0x1a   : > { %v1234_v0 = vld [vmem:[%s2088_s2 + $0x118] sm:$0xf]  ;;  %v1305_v1 = vld [vmem:[%s2088_s2 + $0x128] sm:$0xf0]  ;;  %v1303_v2 = vld [vmem:[%s2088_s2 + $0x11c] sm:$0xf] }
  0x1b   : > { %v1235_v3 = vor.u32 %v1305_v1, %v1234_v0  ;;  %v1236_v4 = vld [vmem:[%s2088_s2 + $0x12c] sm:$0xf0]  ;;  %v1242_v5 = vld [vmem:[%s2088_s2 + $0x120] sm:$0xf]  ;;  %v1306_v6 = vld [vmem:[%s2088_s2 + $0x130] sm:$0xf0] }
  0x1c   : > { %v1239_v7 = vor.u32 %v1303_v2, %v1236_v4  ;;  %v1243_v8 = vor.u32 %v1306_v6, %v1242_v5  ;;  %v1304_v9 = vld [vmem:[%s2088_s2 + $0x124] sm:$0xf]  ;;  %v1244_v10 = vld [vmem:[%s2088_s2 + $0x134] sm:$0xf0]  ;;  %v1214_v11 = vld [vmem:[%s2088_s2 + $0xf0] sm:$0xf] }
  0x1d   : > { %561 = vmatpush.bf16.msra.mxu0 %v1235_v3  ;;  %v1247_v12 = vor.u32 %v1304_v9, %v1244_v10  ;;  %v1300_v13 = vld [vmem:[%s2088_s2 + $0x100] sm:$0xf0]  ;;  %v1298_v14 = vld [vmem:[%s2088_s2 + $0xf4] sm:$0xf]  ;;  %v1216_v15 = vld [vmem:[%s2088_s2 + $0x104] sm:$0xf0] }
  0x1e   : > { %578 = vmatpush.bf16.msra.mxu1 %v1239_v7  ;;  %595 = vmatpush.bf16.msra.mxu2 %v1243_v8  ;;  %v1215_v16 = vor.u32 %v1300_v13, %v1214_v11  ;;  %v1219_v17 = vor.u32 %v1298_v14, %v1216_v15  ;;  %v1222_v18 = vld [vmem:[%s2088_s2 + $0xf8] sm:$0xf]  ;;  %v1301_v19 = vld [vmem:[%s2088_s2 + $0x108] sm:$0xf0]  ;;  %v1299_v20 = vld [vmem:[%s2088_s2 + $0xfc] sm:$0xf] }
  0x1f   : > { %612 = vmatpush.bf16.msra.mxu3 %v1247_v12  ;;  %v1223_v21 = vor.u32 %v1301_v19, %v1222_v18  ;;  %v1224_v22 = vld [vmem:[%s2088_s2 + $0x10c] sm:$0xf0]  ;;  %v1194_v23 = vld [vmem:[%s2088_s2 + $0xc8] sm:$0xf]  ;;  %v1295_v24 = vld [vmem:[%s2088_s2 + $0xd8] sm:$0xf0] }
  0x20   : > { %v1227_v25 = vor.u32 %v1299_v20, %v1224_v22  ;;  %v1293_v26 = vld [vmem:[%s2088_s2 + $0xcc] sm:$0xf]  ;;  %v1196_v27 = vld [vmem:[%s2088_s2 + $0xdc] sm:$0xf0]  ;;  %v1202_v28 = vld [vmem:[%s2088_s2 + $0xd0] sm:$0xf]  ;;  %v1195_v29 = vor.u32 %v1295_v24, %v1194_v23 }
  0x21   : > { %562 = vmatpush.bf16.msra.mxu0 %v1215_v16  ;;  %v1296_v30 = vld [vmem:[%s2088_s2 + $0xe0] sm:$0xf0]  ;;  %v1294_v31 = vld [vmem:[%s2088_s2 + $0xd4] sm:$0xf]  ;;  %v1204_v32 = vld [vmem:[%s2088_s2 + $0xe4] sm:$0xf0]  ;;  %v1199_v33 = vor.u32 %v1293_v26, %v1196_v27 }
  0x22   : > { %579 = vmatpush.bf16.msra.mxu1 %v1219_v17  ;;  %596 = vmatpush.bf16.msra.mxu2 %v1223_v21  ;;  %v1203_v34 = vor.u32 %v1296_v30, %v1202_v28  ;;  %v1174_v35 = vld [vmem:[%s2088_s2 + $0xa0] sm:$0xf]  ;;  %v1290_v36 = vld [vmem:[%s2088_s2 + $0xb0] sm:$0xf0]  ;;  %v1288_v37 = vld [vmem:[%s2088_s2 + $0xa4] sm:$0xf]  ;;  %v1207_v38 = vor.u32 %v1294_v31, %v1204_v32 }
  0x23   : > { %613 = vmatpush.bf16.msra.mxu3 %v1227_v25  ;;  %v1176_v39 = vld [vmem:[%s2088_s2 + $0xb4] sm:$0xf0]  ;;  %v1182_v40 = vld [vmem:[%s2088_s2 + $0xa8] sm:$0xf]  ;;  %v1291_v41 = vld [vmem:[%s2088_s2 + $0xb8] sm:$0xf0]  ;;  %v1175_v44 = vor.u32 %v1290_v36, %v1174_v35 }
  0x24   : > { %v1289_v42 = vld [vmem:[%s2088_s2 + $0xac] sm:$0xf]  ;;  %v1184_v43 = vld [vmem:[%s2088_s2 + $0xbc] sm:$0xf0]  ;;  %v1179_v45 = vor.u32 %v1288_v37, %v1176_v39  ;;  %v1183_v46 = vor.u32 %v1291_v41, %v1182_v40  ;;  %v1154_v47 = vld [vmem:[%s2088_s2 + $0x78] sm:$0xf] }
  0x25   : > { %563 = vmatpush.bf16.msra.mxu0 %v1195_v29  ;;  %v1285_v48 = vld [vmem:[%s2088_s2 + $0x88] sm:$0xf0]  ;;  %v1283_v49 = vld [vmem:[%s2088_s2 + $0x7c] sm:$0xf]  ;;  %v1187_v50 = vor.u32 %v1289_v42, %v1184_v43  ;;  %v1156_v51 = vld [vmem:[%s2088_s2 + $0x8c] sm:$0xf0] }
  0x26   : > { %580 = vmatpush.bf16.msra.mxu1 %v1199_v33  ;;  %597 = vmatpush.bf16.msra.mxu2 %v1203_v34  ;;  %v1162_v52 = vld [vmem:[%s2088_s2 + $0x80] sm:$0xf]  ;;  %v1286_v53 = vld [vmem:[%s2088_s2 + $0x90] sm:$0xf0]  ;;  %v1284_v54 = vld [vmem:[%s2088_s2 + $0x84] sm:$0xf]  ;;  %v1155_v56 = vor.u32 %v1285_v48, %v1154_v47  ;;  %v1159_v57 = vor.u32 %v1283_v49, %v1156_v51 }
  0x27   : > { %614 = vmatpush.bf16.msra.mxu3 %v1207_v38  ;;  %v1164_v55 = vld [vmem:[%s2088_s2 + $0x94] sm:$0xf0]  ;;  %v1163_v58 = vor.u32 %v1286_v53, %v1162_v52  ;;  %v1134_v59 = vld [vmem:[%s2088_s2 + $0x50] sm:$0xf]  ;;  %v1280_v60 = vld [vmem:[%s2088_s2 + $0x60] sm:$0xf0] }
  0x28   : > { %v1278_v61 = vld [vmem:[%s2088_s2 + $0x54] sm:$0xf]  ;;  %v1167_v62 = vor.u32 %v1284_v54, %v1164_v55  ;;  %v1136_v63 = vld [vmem:[%s2088_s2 + $0x64] sm:$0xf0]  ;;  %v1142_v0 = vld [vmem:[%s2088_s2 + $0x58] sm:$0xf]  ;;  %v1135_v4 = vor.u32 %v1280_v60, %v1134_v59 }
  0x29   : > { %564 = vmatpush.bf16.msra.mxu0 %v1175_v44  ;;  %v1281_v1 = vld [vmem:[%s2088_s2 + $0x68] sm:$0xf0]  ;;  %v1279_v2 = vld [vmem:[%s2088_s2 + $0x5c] sm:$0xf]  ;;  %v1144_v3 = vld [vmem:[%s2088_s2 + $0x6c] sm:$0xf0]  ;;  %v1139_v8 = vor.u32 %v1278_v61, %v1136_v63  ;;  %v286_v61 = vlaneseq }
  0x2a   : > { %581 = vmatpush.bf16.msra.mxu1 %v1179_v45  ;;  %598 = vmatpush.bf16.msra.mxu2 %v1183_v46  ;;  %v1114_v5 = vld [vmem:[%s2088_s2 + $0x28] sm:$0xf]  ;;  %v1275_v6 = vld [vmem:[%s2088_s2 + $0x38] sm:$0xf0]  ;;  %v1273_v7 = vld [vmem:[%s2088_s2 + $0x2c] sm:$0xf]  ;;  %v1143_v9 = vor.u32 %v1281_v1, %v1142_v0  ;;  %v1147_v13 = vor.u32 %v1279_v2, %v1144_v3  ;;  %v289_v2 = vstv %s1778_s24 }
  0x2b   : > { %615 = vmatpush.bf16.msra.mxu3 %v1187_v50  ;;  %v1116_v10 = vld [vmem:[%s2088_s2 + $0x3c] sm:$0xf0]  ;;  %v1122_v11 = vld [vmem:[%s2088_s2 + $0x30] sm:$0xf]  ;;  %v1276_v12 = vld [vmem:[%s2088_s2 + $0x40] sm:$0xf0]  ;;  %v1115_v18 = vor.u32 %v1275_v6, %v1114_v5 }
  0x2c   : > { %v1274_v14 = vld [vmem:[%s2088_s2 + $0x34] sm:$0xf]  ;;  %v1124_v15 = vld [vmem:[%s2088_s2 + $0x44] sm:$0xf0]  ;;  %v1094_v16 = vld [vmem:[%s2088_s2] sm:$0xf]  ;;  %v1119_v21 = vor.u32 %v1273_v7, %v1116_v10  ;;  %v1123_v22 = vor.u32 %v1276_v12, %v1122_v11 }
  0x2d   : > { %565 = vmatpush.bf16.msra.mxu0 %v1155_v56  ;;  %v1270_v17 = vld [vmem:[%s2088_s2 + $0x10] sm:$0xf0]  ;;  %v1268_v19 = vld [vmem:[%s2088_s2 + $0x4] sm:$0xf]  ;;  %v1096_v20 = vld [vmem:[%s2088_s2 + $0x14] sm:$0xf0]  ;;  %v1127_v25 = vor.u32 %v1274_v14, %v1124_v15 }
  0x2e   : > { %582 = vmatpush.bf16.msra.mxu1 %v1159_v57  ;;  %599 = vmatpush.bf16.msra.mxu2 %v1163_v58  ;;  %s1796_s13 = scalar_select %p260_p12, %s1495_s19, 1  ;;  %v1102_v23 = vld [vmem:[%s2088_s2 + $0x8] sm:$0xf]  ;;  %v1271_v24 = vld [vmem:[%s2088_s2 + $0x18] sm:$0xf0]  ;;  %v1095_v30 = vor.u32 %v1270_v17, %v1094_v16  ;;  %v1099_v31 = vor.u32 %v1268_v19, %v1096_v20  ;;  %v287_v1 = vshrl.u32 %v286_v61, 7 }
  0x2f   : > { %616 = vmatpush.bf16.msra.mxu3 %v1167_v62  ;;  %s263_s5 = scalar_select %p262_p13, %s1778_s24, 7  ;;  %v1269_v26 = vld [vmem:[%s2088_s2 + $0xc] sm:$0xf]  ;;  %v1104_v27 = vld [vmem:[%s2088_s2 + $0x1c] sm:$0xf0]  ;;  %v1103_v32 = vor.u32 %v1271_v24, %v1102_v23  ;;  %vm1887_vm0 = vcmp.lt.s32.totalorder %v289_v2, 7 }
  0x30   : > { %s1079_s12 = sshll.u32 %s1796_s13, 3  ;;  %v1250_v28 = vld [vmem:[%s2088_s2 + $0x128] sm:$0xf]  ;;  %v1307_v29 = vld [vmem:[%s2088_s2 + $0x138] sm:$0xf0]  ;;  %v1107_v33 = vor.u32 %v1269_v26, %v1104_v27  ;;  %vm291_vm1 = vcmp.lt.s32.totalorder %v287_v1, 7 }
  0x31   : > { %566 = vmatpush.bf16.msra.mxu0 %v1135_v4  ;;  %s265_s8 = sadd.s32 %s1079_s12, %s263_s5  ;;  %v1251_v34 = vor.u32 %v1307_v29, %v1250_v28  ;;  %v1230_v36 = vld [vmem:[%s2088_s2 + $0x100] sm:$0xf]  ;;  %v1302_v37 = vld [vmem:[%s2088_s2 + $0x110] sm:$0xf0]  ;;  %v1210_v39 = vld [vmem:[%s2088_s2 + $0xd8] sm:$0xf] }
  0x32   : > { %583 = vmatpush.bf16.msra.mxu1 %v1139_v8  ;;  %600 = vmatpush.bf16.msra.mxu2 %v1143_v9  ;;  %s1080_s9 = sshll.u32 %s265_s8, 2  ;;  %s2099_s8 = sadd.s32 2, %s1778_s24  ;;  %v1231_v38 = vor.u32 %v1302_v37, %v1230_v36  ;;  %v1297_v40 = vld [vmem:[%s2088_s2 + $0xe8] sm:$0xf0]  ;;  %v1190_v42 = vld [vmem:[%s2088_s2 + $0xb0] sm:$0xf]  ;;  %vm294_vm3 = vmand %vm291_vm1, %vm1887_vm0 }
  0x33   : > { %617 = vmatpush.bf16.msra.mxu3 %v1147_v13  ;;  %s267_s11 = scalar_lea.vmem %s2098_s0, %s1080_s9  ;;  %s2117_s8 = smov (!%p1822_p0, %s2099_s8), 7  ;;  %v1211_v41 = vor.u32 %v1297_v40, %v1210_v39  ;;  %v1292_v43 = vld [vmem:[%s2088_s2 + $0xc0] sm:$0xf0]  ;;  %v1170_v45 = vld [vmem:[%s2088_s2 + $0x88] sm:$0xf]  ;;  %v290_v14 = vadd.s32 1, %v289_v2 }
  0x34   : > { %v1267_v35 = vld [vmem:[%s267_s11] sm:$0xff]  ;;  %s2119_s8 = smov (!%p1822_p0, %s2117_s8), 7  ;;  %v1191_v44 = vor.u32 %v1292_v43, %v1190_v42  ;;  %v1287_v46 = vld [vmem:[%s2088_s2 + $0x98] sm:$0xf0]  ;;  %v1282_v49 = vld [vmem:[%s2088_s2 + $0x70] sm:$0xf0] }
  0x35   : > { %567 = vmatpush.bf16.msra.mxu0 %v1115_v18  ;;  %s278_s27 = sadd.s32 %s1079_s12, %s2119_s8  ;;  %v1171_v47 = vor.u32 %v1287_v46, %v1170_v45  ;;  %v1150_v48 = vld [vmem:[%s2088_s2 + $0x60] sm:$0xf]  ;;  %v1130_v52 = vld [vmem:[%s2088_s2 + $0x38] sm:$0xf]  ;;  %v1277_v53 = vld [vmem:[%s2088_s2 + $0x48] sm:$0xf0] }
  0x36   : > { %584 = vmatpush.bf16.msra.mxu1 %v1119_v21  ;;  %601 = vmatpush.bf16.msra.mxu2 %v1123_v22  ;;  %s1086_s6 = sshll.u32 %s278_s27, 2  ;;  %v1151_v51 = vor.u32 %v1282_v49, %v1150_v48  ;;  %v1131_v54 = vor.u32 %v1277_v53, %v1130_v52  ;;  %v1110_v55 = vld [vmem:[%s2088_s2 + $0x10] sm:$0xf]  ;;  %v1272_v56 = vld [vmem:[%s2088_s2 + $0x20] sm:$0xf0]  ;;  %s1509_s24 = smov 64  }
  0x37   : > { %618 = vmatpush.bf16.msra.mxu3 %v1127_v25  ;;  %s280_s0 = scalar_lea.vmem %s2087_s1, %s1086_s6  ;;  %v1111_v57 = vor.u32 %v1272_v56, %v1110_v55  ;;  %vm293_vm2 = vcmp.lt.s32.totalorder %v290_v14, 7  ;;  %vm724_vm5 = vcmask 523264   ;;  %s1077_s27 = sshll.u32 %s256_s23, 5 }
  0x38   : > { %v298_v50 = vld [vmem:[%s280_s0] sm:$0xf]  ;;  %vm295_vm4 = vmand %vm291_vm1, %vm293_vm2  ;;  %s2020_s6 = scalar_lea.vmem [#allocation2], %s1077_s27  ;;  %s1257_s9 = sshll.u32 %s1495_s19, 4 }
  0x39   : > { %568 = vmatpush.bf16.msra.mxu0 %v1095_v30  ;;  %s964_s0 = sadd.s32 %s1308_s30, %s1257_s9  ;;  %s1433_s27 = scalar_lea.hbm %s2090_s4, 256 }
  0x3a   : > { %585 = vmatpush.bf16.msra.mxu1 %v1099_v31  ;;  %602 = vmatpush.bf16.msra.mxu2 %v1103_v32  ;;  %s1258_s5 = sshll.u32 %s964_s0, 3 }
  0x3b   : > { %619 = vmatpush.bf16.msra.mxu3 %v1107_v33  ;;  %s966_s19 = scalar_lea.hbm %s2090_s4, %s1258_s5 }
  0x3c   : > { %569 = vmatmul.bf16.vlgmr.msra.gmra.mxu0 %v1267_v35  ;;  %s969_s11 = sshll.u32 %s966_s19, 4  ;;  %s970_s11 = int_to_ptr.hbm [resolvable:$true] %s969_s11 }
  0x3d   : > { %629 = vmatpush.bf16.msrb.mxu0 %v1251_v34  ;;  %586 = vmatmul.bf16.vlgmr.msra.gmra.mxu1 %v1267_v35  ;;  %s1427_s13 = sshra.s32 %s970_s11, 4  ;;  %s1428_s13 = int_to_ptr.hbm [resolvable:$true] %s1427_s13 }
  0x3e   : > { %1309 = vmatpush.bf16.msrb.mxu1 %v1251_v34  ;;  %603 = vmatmul.bf16.vlgmr.msra.gmra.mxu2 %v1267_v35  ;;  %s1429_s12 = scalar_lea.hbm %s1428_s13, 32  ;;  %p1434_p5 = scmp.lt.s32.totalorder %s1428_s13, %s2090_s4 }
  0x3f   : > { %620 = vmatmul.bf16.vlgmr.msra.gmra.mxu3 %v1267_v35  ;;  %p1430_p1 = scmp.ne.s32.totalorder %s1428_s13, %s1429_s12  ;;  %p1435_p6 = scmp.lt.s32.totalorder %s1433_s27, %s1429_s12 }
  0x41   : > { %630 = vmatpush.bf16.msrb.mxu0 %v1231_v38  ;;  %p1431_p2 = pnand %p1430_p1, %p1589_p3  ;;  %p1436_p7 = por %p1435_p6, %p1434_p5 }
  0x42   : > { %1310 = vmatpush.bf16.msrb.mxu1 %v1231_v38 }
  0x43   : > { %p1432_p4 = pneg %p1431_p2 }
  0x45   : > { %631 = vmatpush.bf16.msrb.mxu0 %v1211_v41  ;;  %p1437_p9 = pnand %p1436_p7, %p1432_p4 }
  0x46   : > { %1311 = vmatpush.bf16.msrb.mxu1 %v1211_v41 }
  0x49   : > { %632 = vmatpush.bf16.msrb.mxu0 %v1191_v44 }
  0x4a   : > { %1312 = vmatpush.bf16.msrb.mxu1 %v1191_v44 }
  0x4c   : > { %574 = vmatmul.bf16.gmra.mxu0 %v298_v50 }
  0x4d   : > { %633 = vmatpush.bf16.msrb.mxu0 %v1171_v47  ;;  %591 = vmatmul.bf16.gmra.mxu1 %v298_v50 }
  0x4e   : > { %1313 = vmatpush.bf16.msrb.mxu1 %v1171_v47  ;;  %608 = vmatmul.bf16.gmra.mxu2 %v298_v50  ;;  %v1392_v47 = vld [vmem:[%s2089_s3] ss:$0 sm:$0xff] }
  0x4f   : > { %624 = vmatmul.bf16.gmra.mxu3 %v298_v50 }
  0x51   : > { %634 = vmatpush.bf16.msrb.mxu0 %v1151_v51 }
  0x52   : > { %1314 = vmatpush.bf16.msrb.mxu1 %v1151_v51 }
  0x55   : > { %635 = vmatpush.bf16.msrb.mxu0 %v1131_v54 }
  0x56   : > { %1315 = vmatpush.bf16.msrb.mxu1 %v1131_v54 }
  0x59   : > { %636 = vmatpush.bf16.msrb.mxu0 %v1111_v57 }
  0x5a   : > { %1316 = vmatpush.bf16.msrb.mxu1 %v1111_v57 }
  0x5c   : > { %637 = vmatmul.bf16.vlgmr.msrb.gmra.mxu0 %v1267_v35 }
  0x5d   : > { %641 = vmatmul.bf16.vlgmr.msrb.gmra.mxu1 %v298_v50 }
  0xb9   : > { %v1882_v58 = vpop.f32.mrf.mxu0 }
  0xba   : > { %v587_v59 = vpop.f32.mrf.mxu1 }
  0xc1   : > { %v604_v60 = vpop.f32.mrf.mxu2  ;;  %v1884_v63 = vpop.f32.mrf.mxu0 }
  0xc2   : > { %v621_v62 = vpop.f32.mrf.mxu3  ;;  %v589_v0 = vpop.f32.mrf.mxu1  ;;  %v646_v3 = vrot.slane %v604_v60, 1  ;;  %v717_v54 = vadd.f32 %v1392_v47, %v1884_v63 }
  0xc4   : > { %v728_v55 = vsel %vm724_vm5, %v717_v54, 0.0 }
  0xc9   : > { %v606_v5 = vpop.f32.mrf.mxu2  ;;  %v575_v8 = vpop.f32.mrf.mxu0 }
  0xca   : > { %v647_v6 = vrot.slane %v606_v5, 1  ;;  %v622_v7 = vpop.f32.mrf.mxu3  ;;  %v592_v10 = vpop.f32.mrf.mxu1  ;;  %v1510_v5 = vmov 64.0  }
  0xcb   : > { %v658_v9 = vsel %vm1887_vm0, %v622_v7, 0.0  ;;  %1395 = vrcp.f32 %v1510_v5 }
  0xcc   : > { %v649_v11 = vsel %vm291_vm1, %v647_v6, %v646_v3  ;;  %v1894_v12 = vadd.f32 %v658_v9, %v587_v59  ;;  %v648_v13 = vsel %vm291_vm1, %v646_v3, %v647_v6 }
  0xcd   : > { %v652_v15 = vsel %vm291_vm1, %v648_v13, 0.0  ;;  %v653_v16 = vsel %vm291_vm1, %v649_v11, 0.0 }
  0xce   : > { %672 = vrot.lane.b32.xlu0 %v652_v15, %s1509_s24  ;;  %v682_v17 = vadd.f32 %v652_v15, %v587_v59  ;;  %v683_v18 = vadd.f32 %v653_v16, %v589_v0  ;;  %v720_v60 = vadd.f32 %v1392_v47, %v1894_v12 }
  0xd0   : > { %v684_v19 = vadd.f32 %v682_v17, %v658_v9 }
  0xd1   : > { %v609_v20 = vpop.f32.mrf.mxu2  ;;  %v576_v22 = vpop.f32.mrf.mxu0 }
  0xd2   : > { %v625_v21 = vpop.f32.mrf.mxu3  ;;  %v593_v24 = vpop.f32.mrf.mxu1 }
  0xd3   : > { %v659_v23 = vsel %vm293_vm2, %v625_v21, 0.0  ;;  %v1396_v6 = vpop.eup %1395 }
  0xd4   : > { %v681_v25 = vadd.f32 %v659_v23, %v589_v0  ;;  %v685_v26 = vadd.f32 %v683_v18, %v659_v23  ;;  %v737_v0 = vsel %vm724_vm5, %v720_v60, 0.0  ;;  %v750_v7 = vmul.f32 64.0, %v1396_v6 }
  0xd5   : > { %vm754_vm6 = vweird.f32 %v1396_v6 }
  0xd6   : > { %674 = vrot.lane.b32.xlu0 %v653_v16, %s1509_s24  ;;  %v721_v3 = vadd.f32 %v1392_v47, %v681_v25  ;;  %v751_v8 = vsub.f32 1.0, %v750_v7 }
  0xd8   : > { %v740_v4 = vsel %vm724_vm5, %v721_v3, 0.0  ;;  %v752_v9 = vmul.f32 %v1396_v6, %v751_v8 }
  0xd9   : > { %v610_v27 = vpop.f32.mrf.mxu2  ;;  %v638_v28 = vpop.f32.mrf.mxu0 }
  0xda   : > { %v627_v29 = vpop.f32.mrf.mxu3  ;;  %v642_v30 = vpop.f32.mrf.mxu1  ;;  %v753_v10 = vadd.f32 %v1396_v6, %v752_v9 }
  0xdb   : > { %v661_v31 = vrot.slane %v642_v30, 1 }
  0xdc   : > { %v1931_v11 = vsel %vm754_vm6, %v1396_v6, %v753_v10  ;;  %v1992_v6 = vld [vmem:[%s2089_s3 + $0x2] ss:$0 sm:$0xff] }
  0xe1   : > { %v639_v32 = vpop.f32.mrf.mxu0 }
  0xe2   : > { %v660_v33 = vrot.slane %v639_v32, 1  ;;  %v644_v34 = vpop.f32.mrf.mxu1 }
  0xe4   : > { %v662_v35 = vsel %vm291_vm1, %v660_v33, %v661_v31  ;;  %v663_v37 = vsel %vm291_vm1, %v661_v31, %v660_v33 }
  0xe5   : > { %v668_v36 = vsel %vm294_vm3, %v662_v35, 0.0  ;;  %v669_v38 = vsel %vm295_vm4, %v663_v37, 0.0 }
  0xe6   : > { %688 = vrot.lane.b32.xlu1 %v668_v36, %s1509_s24 }
  0xee   : > { %690 = vrot.lane.b32.xlu1 %v669_v38, %s1509_s24 }
 0x140   : > { %v673_v39 = vpop.permute.xlu0 %672 }
 0x141   : > { %v678_v40 = vadd.f32 %v673_v39, %v1882_v58 }
 0x143   : > { %701 = vrot.lane.b32.xlu2 %v678_v40, %s1509_s24 }
 0x148   : > { %v675_v41 = vpop.permute.xlu0 %674 }
 0x149   : > { %v679_v42 = vadd.f32 %v675_v41, %v1884_v63  ;;  %v716_v63 = vadd.f32 %v1392_v47, %v1882_v58 }
 0x14b   : > { %703 = vrot.lane.b32.xlu2 %v679_v42, %s1509_s24  ;;  %v725_v2 = vsel %vm724_vm5, %v716_v63, 0.0 }
 0x158   : > { %v689_v43 = vpop.permute.xlu1 %688 }
 0x159   : > { %v694_v44 = vadd.f32 %v689_v43, %v684_v19 }
 0x15b   : > { %709 = vrot.lane.b32.xlu0 %v694_v44, %s1509_s24 }
 0x160   : > { %v691_v45 = vpop.permute.xlu1 %690 }
 0x161   : > { %v695_v46 = vadd.f32 %v691_v45, %v685_v26 }
 0x163   : > { %711 = vrot.lane.b32.xlu1 %v695_v46, %s1509_s24 }
 0x19d   : > { %v702_v48 = vpop.permute.xlu2 %701 }
 0x19e   : > { %v718_v49 = vadd.f32 %v1392_v47, %v702_v48 }
 0x1a0   : > { %v731_v50 = vsel %vm724_vm5, %v718_v49, 0.0 }
 0x1a1   : > { %732 = vadd.xlane.f32.xlu2 %v731_v50 }
 0x1a5   : > { %v704_v51 = vpop.permute.xlu2 %703 }
 0x1a6   : > { %v719_v52 = vadd.f32 %v1392_v47, %v704_v51 }
 0x1a8   : > { %v734_v53 = vsel %vm724_vm5, %v719_v52, 0.0 }
 0x1a9   : > { %735 = vadd.xlane.f32.xlu0 %v734_v53 }
 0x1b1   : > { %729 = vadd.xlane.f32.xlu0 %v728_v55 }
 0x1cd   : > { %v710_v56 = vpop.permute.xlu0 %709 }
 0x1ce   : > { %v722_v57 = vadd.f32 %v1392_v47, %v710_v56 }
 0x1d0   : > { %v743_v59 = vsel %vm724_vm5, %v722_v57, 0.0 }
 0x1d1   : > { %744 = vadd.xlane.f32.xlu1 %v743_v59 }
 0x1d5   : > { %v712_v61 = vpop.permute.xlu1 %711 }
 0x1d6   : > { %v723_v62 = vadd.f32 %v1392_v47, %v712_v61 }
 0x1d8   : > { %v746_v1 = vsel %vm724_vm5, %v723_v62, 0.0 }
 0x1d9   : > { %738 = vadd.xlane.f32.xlu1 %v737_v0  ;;  %747 = vadd.xlane.f32.xlu2 %v746_v1 }
 0x1e1   : > { %726 = vadd.xlane.f32.xlu2 %v725_v2  ;;  %v1986_v2 = vld [vmem:[%s2089_s3 + $0x1] ss:$0 sm:$0xff] }
 0x1e9   : > { %741 = vadd.xlane.f32.xlu2 %v740_v4 }
 0x214   : > { %v733_v12 = vpop.xlane.xlu2 %732 }
 0x215   : > { %v758_v58 = vmul.f32 %v1931_v11, %v733_v12 }
 0x217   : > { %v1934_v13 = vsub.f32 %v718_v49, %v758_v58 }
 0x219   : > { %v774_v14 = vmul.f32 %v1934_v13, %v1934_v13 }
 0x21b   : > { %v786_v15 = vsel %vm724_vm5, %v774_v14, 0.0 }
 0x21c   : > { %787 = vadd.xlane.f32.xlu0 %v786_v15  ;;  %v736_v16 = vpop.xlane.xlu0 %735 }
 0x21d   : > { %v759_v17 = vmul.f32 %v1931_v11, %v736_v16 }
 0x21f   : > { %v1940_v18 = vsub.f32 %v719_v52, %v759_v17 }
 0x221   : > { %v775_v19 = vmul.f32 %v1940_v18, %v1940_v18 }
 0x223   : > { %v789_v20 = vsel %vm724_vm5, %v775_v19, 0.0 }
 0x224   : > { %790 = vadd.xlane.f32.xlu1 %v789_v20  ;;  %v730_v21 = vpop.xlane.xlu0 %729 }
 0x225   : > { %v757_v24 = vmul.f32 %v1931_v11, %v730_v21 }
 0x227   : > { %v1951_v27 = vsub.f32 %v717_v54, %v757_v24 }
 0x229   : > { %v773_v34 = vmul.f32 %v1951_v27, %v1951_v27 }
 0x22b   : > { %v783_v38 = vsel %vm724_vm5, %v773_v34, 0.0 }
 0x244   : > { %v745_v22 = vpop.xlane.xlu1 %744 }
 0x245   : > { %v762_v23 = vmul.f32 %v1931_v11, %v745_v22 }
 0x247   : > { %v1947_v25 = vsub.f32 %v722_v57, %v762_v23 }
 0x249   : > { %v778_v26 = vmul.f32 %v1947_v25, %v1947_v25 }
 0x24b   : > { %v798_v28 = vsel %vm724_vm5, %v778_v26, 0.0 }
 0x24c   : > { %v748_v29 = vpop.xlane.xlu2 %747  ;;  %799 = vadd.xlane.f32.xlu2 %v798_v28  ;;  %v739_v30 = vpop.xlane.xlu1 %738 }
 0x24d   : > { %v763_v31 = vmul.f32 %v1931_v11, %v748_v29  ;;  %v760_v33 = vmul.f32 %v1931_v11, %v739_v30 }
 0x24f   : > { %v1955_v32 = vsub.f32 %v723_v62, %v763_v31  ;;  %v1962_v36 = vsub.f32 %v720_v60, %v760_v33 }
 0x251   : > { %v779_v35 = vmul.f32 %v1955_v32, %v1955_v32  ;;  %v776_v42 = vmul.f32 %v1962_v36, %v1962_v36 }
 0x253   : > { %v801_v37 = vsel %vm724_vm5, %v779_v35, 0.0  ;;  %v792_v45 = vsel %vm724_vm5, %v776_v42, 0.0 }
 0x254   : > { %802 = vadd.xlane.f32.xlu0 %v801_v37  ;;  %v727_v39 = vpop.xlane.xlu2 %726  ;;  %784 = vadd.xlane.f32.xlu2 %v783_v38 }
 0x255   : > { %v756_v40 = vmul.f32 %v1931_v11, %v727_v39 }
 0x257   : > { %v1967_v41 = vsub.f32 %v716_v63, %v756_v40 }
 0x259   : > { %v772_v43 = vmul.f32 %v1967_v41, %v1967_v41 }
 0x25b   : > { %v780_v44 = vsel %vm724_vm5, %v772_v43, 0.0 }
 0x25c   : > { %781 = vadd.xlane.f32.xlu1 %v780_v44  ;;  %v742_v46 = vpop.xlane.xlu2 %741  ;;  %793 = vadd.xlane.f32.xlu0 %v792_v45 }
 0x25d   : > { %v761_v47 = vmul.f32 %v1931_v11, %v742_v46 }
 0x25f   : > { %v1976_v48 = vsub.f32 %v721_v3, %v761_v47 }
 0x261   : > { %v777_v49 = vmul.f32 %v1976_v48, %v1976_v48 }
 0x263   : > { %v795_v50 = vsel %vm724_vm5, %v777_v49, 0.0 }
 0x264   : > { %796 = vadd.xlane.f32.xlu1 %v795_v50 }
 0x28f   : > { %v788_v51 = vpop.xlane.xlu0 %787 }
 0x290   : > { %v806_v52 = vmul.f32 %v788_v51, %v1931_v11 }
 0x292   : > { %v814_v53 = vadd.f32 1e-05, %v806_v52 }
 0x294   : > { %1397 = vrsqrt.f32 %v814_v53  ;;  %vm846_vm8 = vweird.f32 %v814_v53 }
 0x297   : > { %v791_v54 = vpop.xlane.xlu1 %790 }
 0x298   : > { %v807_v55 = vmul.f32 %v791_v54, %v1931_v11 }
 0x29a   : > { %v1398_v56 = vpop.eup %1397  ;;  %v815_v57 = vadd.f32 1e-05, %v807_v55 }
 0x29b   : > { %v841_v59 = vmul.f32 %v1398_v56, %v814_v53  ;;  %vm847_vm7 = vweird.f32 %v1398_v56 }
 0x29c   : > { %1399 = vrsqrt.f32 %v815_v57  ;;  %vm848_vm9 = vmor %vm846_vm8, %vm847_vm7  ;;  %vm856_vm11 = vweird.f32 %v815_v57 }
 0x29d   : > { %v842_v60 = vmul.f32 %v1398_v56, %v841_v59 }
 0x29f   : > { %v843_v61 = vmul.f32 0.5, %v842_v60 }
 0x2a1   : > { %v844_v62 = vsub.f32 1.5, %v843_v61 }
 0x2a2   : > { %v1400_v0 = vpop.eup %1399 }
 0x2a3   : > { %v845_v1 = vmul.f32 %v1398_v56, %v844_v62  ;;  %v851_v63 = vmul.f32 %v1400_v0, %v815_v57  ;;  %vm857_vm10 = vweird.f32 %v1400_v0 }
 0x2a4   : > { %vm858_vm12 = vmor %vm856_vm11, %vm857_vm10 }
 0x2a5   : > { %v849_v3 = vsel %vm848_vm9, %v1398_v56, %v845_v1  ;;  %v852_v4 = vmul.f32 %v1400_v0, %v851_v63 }
 0x2a6   : > { %v902_v5 = vmul.f32 %v849_v3, %v1934_v13 }
 0x2a7   : > { %v853_v7 = vmul.f32 0.5, %v852_v4 }
 0x2a8   : > { %v911_v8 = vmul.f32 %v1986_v2, %v902_v5 }
 0x2a9   : > { %v854_v9 = vsub.f32 1.5, %v853_v7 }
 0x2aa   : > { %v920_v10 = vadd.f32 %v1992_v6, %v911_v8 }
 0x2ab   : > { %v855_v12 = vmul.f32 %v1400_v0, %v854_v9 }
 0x2ac   : > { %928 = vrot.lane.b32.xlu2 %v920_v10, %s1509_s24 }
 0x2ad   : > { %v859_v58 = vsel %vm858_vm12, %v1400_v0, %v855_v12 }
 0x2ae   : > { %v903_v13 = vmul.f32 %v859_v58, %v1940_v18 }
 0x2b0   : > { %v912_v14 = vmul.f32 %v1986_v2, %v903_v13 }
 0x2b2   : > { %v921_v15 = vadd.f32 %v1992_v6, %v912_v14 }
 0x2b4   : > { %930 = vrot.lane.b32.xlu0 %v921_v15, %s1509_s24 }
 0x2bf   : > { %v800_v16 = vpop.xlane.xlu2 %799 }
 0x2c0   : > { %v810_v17 = vmul.f32 %v800_v16, %v1931_v11 }
 0x2c2   : > { %v818_v19 = vadd.f32 1e-05, %v810_v17 }
 0x2c4   : > { %1401 = vrsqrt.f32 %v818_v19  ;;  %vm886_vm14 = vweird.f32 %v818_v19 }
 0x2c7   : > { %v803_v20 = vpop.xlane.xlu0 %802  ;;  %v785_v54 = vpop.xlane.xlu2 %784 }
 0x2c8   : > { %v811_v21 = vmul.f32 %v803_v20, %v1931_v11  ;;  %v805_v56 = vmul.f32 %v785_v54, %v1931_v11 }
 0x2ca   : > { %v1402_v22 = vpop.eup %1401  ;;  %v819_v23 = vadd.f32 1e-05, %v811_v21 }
 0x2cb   : > { %v881_v24 = vmul.f32 %v1402_v22, %v818_v19  ;;  %vm887_vm13 = vweird.f32 %v1402_v22 }
 0x2cc   : > { %1403 = vrsqrt.f32 %v819_v23  ;;  %vm888_vm15 = vmor %vm886_vm14, %vm887_vm13  ;;  %vm896_vm1 = vweird.f32 %v819_v23 }
 0x2cd   : > { %v882_v26 = vmul.f32 %v1402_v22, %v881_v24 }
 0x2cf   : > { %v883_v18 = vmul.f32 0.5, %v882_v26  ;;  %v782_v29 = vpop.xlane.xlu1 %781  ;;  %v794_v9 = vpop.xlane.xlu0 %793 }
 0x2d0   : > { %v804_v34 = vmul.f32 %v782_v29, %v1931_v11  ;;  %v808_v12 = vmul.f32 %v794_v9, %v1931_v11 }
 0x2d1   : > { %v884_v28 = vsub.f32 1.5, %v883_v18 }
 0x2d2   : > { %v1404_v30 = vpop.eup %1403  ;;  %v812_v40 = vadd.f32 1e-05, %v804_v34  ;;  %v816_v13 = vadd.f32 1e-05, %v808_v12 }
 0x2d3   : > { %v885_v31 = vmul.f32 %v1402_v22, %v884_v28  ;;  %v891_v33 = vmul.f32 %v1404_v30, %v819_v23  ;;  %vm897_vm0 = vweird.f32 %v1404_v30 }
 0x2d4   : > { %vm898_vm2 = vmor %vm896_vm1, %vm897_vm0  ;;  %1405 = vrsqrt.f32 %v812_v40  ;;  %vm826_vm4 = vweird.f32 %v812_v40  ;;  %vm866_vm11 = vweird.f32 %v816_v13 }
 0x2d5   : > { %v889_v35 = vsel %vm888_vm15, %v1402_v22, %v885_v31  ;;  %v892_v37 = vmul.f32 %v1404_v30, %v891_v33 }
 0x2d6   : > { %v906_v38 = vmul.f32 %v889_v35, %v1947_v25 }
 0x2d7   : > { %v893_v39 = vmul.f32 0.5, %v892_v37  ;;  %v797_v14 = vpop.xlane.xlu1 %796 }
 0x2d8   : > { %v915_v42 = vmul.f32 %v1986_v2, %v906_v38  ;;  %v809_v16 = vmul.f32 %v797_v14, %v1931_v11 }
 0x2d9   : > { %v894_v43 = vsub.f32 1.5, %v893_v39 }
 0x2da   : > { %v924_v44 = vadd.f32 %v1992_v6, %v915_v42  ;;  %v1406_v25 = vpop.eup %1405  ;;  %v817_v20 = vadd.f32 1e-05, %v809_v16 }
 0x2db   : > { %v895_v45 = vmul.f32 %v1404_v30, %v894_v43  ;;  %v821_v51 = vmul.f32 %v1406_v25, %v812_v40  ;;  %vm827_vm3 = vweird.f32 %v1406_v25 }
 0x2dc   : > { %938 = vrot.lane.b32.xlu1 %v924_v44, %s1509_s24  ;;  %vm828_vm6 = vmor %vm826_vm4, %vm827_vm3  ;;  %vm876_vm14 = vweird.f32 %v817_v20 }
 0x2dd   : > { %v899_v46 = vsel %vm898_vm2, %v1404_v30, %v895_v45  ;;  %v822_v52 = vmul.f32 %v1406_v25, %v821_v51 }
 0x2de   : > { %v907_v47 = vmul.f32 %v899_v46, %v1955_v32  ;;  %v813_v32 = vadd.f32 1e-05, %v805_v56 }
 0x2df   : > { %v823_v53 = vmul.f32 0.5, %v822_v52 }
 0x2e0   : > { %v916_v49 = vmul.f32 %v1986_v2, %v907_v47  ;;  %1407 = vrsqrt.f32 %v813_v32  ;;  %vm836_vm8 = vweird.f32 %v813_v32 }
 0x2e1   : > { %v824_v55 = vsub.f32 1.5, %v823_v53  ;;  %1409 = vrsqrt.f32 %v816_v13 }
 0x2e2   : > { %v925_v50 = vadd.f32 %v1992_v6, %v916_v49  ;;  %1411 = vrsqrt.f32 %v817_v20 }
 0x2e3   : > { %v825_v57 = vmul.f32 %v1406_v25, %v824_v55 }
 0x2e4   : > { %940 = vrot.lane.b32.xlu0 %v925_v50, %s1509_s24  ;;  %s967_s24 = sshll.u32 %s2020_s6, 4  ;;  %s968_s24 = int_to_ptr.vmem [resolvable:$true] %s967_s24 }
 0x2e5   : > { %v829_v59 = vsel %vm828_vm6, %v1406_v25, %v825_v57 }
 0x2e6   : > { %v900_v60 = vmul.f32 %v829_v59, %v1967_v41  ;;  %v1408_v62 = vpop.eup %1407 }
 0x2e7   : > { %v831_v1 = vmul.f32 %v1408_v62, %v813_v32  ;;  %vm837_vm7 = vweird.f32 %v1408_v62  ;;  %v1410_v21 = vpop.eup %1409 }
 0x2e8   : > { %v909_v61 = vmul.f32 %v1986_v2, %v900_v60  ;;  %vm838_vm9 = vmor %vm836_vm8, %vm837_vm7  ;;  %v861_v22 = vmul.f32 %v1410_v21, %v816_v13  ;;  %v1412_v23 = vpop.eup %1411  ;;  %vm867_vm10 = vweird.f32 %v1410_v21 }
 0x2e9   : > { %v832_v4 = vmul.f32 %v1408_v62, %v831_v1  ;;  %v871_v26 = vmul.f32 %v1412_v23, %v817_v20  ;;  %vm868_vm12 = vmor %vm866_vm11, %vm867_vm10  ;;  %vm877_vm13 = vweird.f32 %v1412_v23 }
 0x2ea   : > { %v918_v0 = vadd.f32 %v1992_v6, %v909_v61  ;;  %vm878_vm15 = vmor %vm876_vm14, %vm877_vm13 }
 0x2eb   : > { %v833_v5 = vmul.f32 0.5, %v832_v4  ;;  %v872_v28 = vmul.f32 %v1412_v23, %v871_v26 }
 0x2ed   : > { %v834_v7 = vsub.f32 1.5, %v833_v5  ;;  %v873_v30 = vmul.f32 0.5, %v872_v28 }
 0x2ef   : > { %v835_v41 = vmul.f32 %v1408_v62, %v834_v7  ;;  %v874_v31 = vsub.f32 1.5, %v873_v30 }
 0x2f1   : > { %v839_v8 = vsel %vm838_vm9, %v1408_v62, %v835_v41  ;;  %v875_v34 = vmul.f32 %v1412_v23, %v874_v31 }
 0x2f2   : > { %v901_v10 = vmul.f32 %v839_v8, %v1951_v27  ;;  %v862_v27 = vmul.f32 %v1410_v21, %v861_v22 }
 0x2f3   : > { %v879_v37 = vsel %vm878_vm15, %v1412_v23, %v875_v34 }
 0x2f4   : > { %v910_v58 = vmul.f32 %v1986_v2, %v901_v10  ;;  %v863_v24 = vmul.f32 0.5, %v862_v27  ;;  %v905_v38 = vmul.f32 %v879_v37, %v1976_v48 }
 0x2f6   : > { %v919_v15 = vadd.f32 %v1992_v6, %v910_v58  ;;  %v864_v18 = vsub.f32 1.5, %v863_v24  ;;  %v914_v42 = vmul.f32 %v1986_v2, %v905_v38 }
 0x2f8   : > { %v865_v29 = vmul.f32 %v1410_v21, %v864_v18  ;;  %v923_v48 = vadd.f32 %v1992_v6, %v914_v42 }
 0x2fa   : > { %v869_v11 = vsel %vm868_vm12, %v1410_v21, %v865_v29 }
 0x2fb   : > { %v904_v33 = vmul.f32 %v869_v11, %v1962_v36 }
 0x2fd   : > { %v913_v35 = vmul.f32 %v1986_v2, %v904_v33 }
 0x2ff   : > { %v922_v39 = vadd.f32 %v1992_v6, %v913_v35 }
 0x306   : > { %v929_v63 = vpop.permute.xlu2 %928 }
 0x307   : > { %v934_v3 = vsel %vm724_vm5, %v918_v0, %v929_v63 }
 0x308   : > { %946 = vst [vmem:[%s2020_s6] sm:$0xff] %v934_v3 }
 0x326   : > { %v931_v17 = vpop.permute.xlu0 %930 }
 0x327   : > { %v935_v19 = vsel %vm724_vm5, %v919_v15, %v931_v17 }
 0x328   : > { %947 = vst [vmem:[%s2020_s6 + $0x10] sm:$0xff] %v935_v19 }
 0x34e   : > { %v939_v40 = vpop.permute.xlu1 %938 }
 0x34f   : > { %v944_v36 = vsel %vm724_vm5, %v922_v39, %v939_v40 }
 0x350   : > { %1252 = vst [vmem:[%s2020_s6 + $0x8] sm:$0xff] %v944_v36 }
 0x356   : > { %v941_v43 = vpop.permute.xlu0 %940 }
 0x357   : > { %v945_v44 = vsel %vm724_vm5, %v923_v48, %v941_v43 }
 0x358   : > { %1253 = vst [vmem:[%s2020_s6 + $0x18] sm:$0xff] %v945_v44 }
 0x359   : > { %1440 = shalt.err (!%p1437_p9)
}
 0x35a   : > { %s1511_s23 = smov 128   ;;  %s1512_s6 = smov 8  }
 0x35b   : > { %1317 = dma.vmem_to_hbm [thread:$0]  (%p1589_p3), %s968_s24, 512, %s970_s11, %s952_s26, %s1511_s23, %s1511_s23, %s1512_s6  }
 0x35c PF: > { %p1323_p10 = scmp.ge.s32.totalorder %s1507_s22, 2  ;;  %s984_s0 = sand.u32 1, %s1479_s15  }
 0x35d   : > { %s985_s5 = scalar_lea.sflag [#allocation3], %s984_s0 }
 0x35e   : > { %p1320_p11 = pnand %p1323_p10, %p1598_p8 }
 0x360   : > { %p1321_p12 = pneg %p1320_p11 }
 0x362   : > { %1474 = dma.done.wait (%p1321_p12), %s985_s5, 512  }
 0x363   : > { %1476 = vsyncadd (%p1321_p12), %s985_s5, 4294966784  ;;  %s17_s22 = sadd.s32 1, %s1507_s22   ;;  %s2102_s28 = sld [smem:[#allocation5_spill]] }
 0x364   : > { %p14_p13 = scmp.ge.s32.totalorder %s17_s22, 10   ;;  %s2103_s15 = smov %s1483_s16 }
 0x365   : > { %s2104_s16 = smov %s1487_s17  ;;  %s2105_s17 = smov %s1607_s7 }
 0x366   : > { %s2106_s18 = smov %s1499_s20  ;;  %s2107_s19 = smov %s1503_s21 }
 0x367   : > { %s2108_s20 = smov %s2111_s25  ;;  %16 = sbr.rel (!%p14_p13) target bundleno = 7 (0x7), region = 75 }
 0x369   : > { %s2109_s21 = smov %s2102_s28 }
 0x36c   :  { %991 = vsyncpa [#allocation3], 1 }
 0x36d   :  { %993 = vsyncpa [#allocation3 + $0x1], 1 }

</bundles_post_ra>
